<compile_context>
chip_gen: v6e
topology: v6e:2x2x1
jax: 0.10.0
libtpu: 0.0.40
codegen_flags: <defaults>
</compile_context>

<pallas_src>
import jax
import jax.numpy as jnp
from jax.experimental import pallas as pl
from jax.experimental.pallas import tpu as pltpu


# --------------------------------------------------------------------------
# Pallas kernel: elementwise node-value initialization (value <- inputs).
# --------------------------------------------------------------------------
def _node_init_kernel(in_ref, value_ref):
    value_ref[...] = in_ref[...]


_MAX_LANES = 8192      # lane-dense last dim (multiple of 128)
_TILE_ROWS = 256       # sublane tile (multiple of 8)
_TILE_LANES = 2048     # lane tile (multiple of 128) -> 2 MiB per f32 buffer


def _choose_lane_layout(total: int) -> tuple[int, int]:
    """Pick (rows, lanes): lanes a multiple of 128, rows a multiple of 8."""
    assert total % 1024 == 0
    lanes = 128
    while (
        total % (lanes * 2) == 0
        and (total // (lanes * 2)) % 8 == 0
        and lanes * 2 <= _MAX_LANES
    ):
        lanes *= 2
    return total // lanes, lanes


def _node_init_2d(x2d: jax.Array) -> jax.Array:
    """Tiled, double-buffered identity copy of a lane-dense (rows, lanes) slab."""
    rows, lanes = x2d.shape
    tm = min(rows, _TILE_ROWS)     # rows is a multiple of 8 -> tm is too
    tn = min(lanes, _TILE_LANES)   # lanes is a multiple of 128 -> tn is too
    grid = (pl.cdiv(rows, tm), pl.cdiv(lanes, tn))
    return pl.pallas_call(
        _node_init_kernel,
        out_shape=jax.ShapeDtypeStruct((rows, lanes), x2d.dtype),
        grid_spec=pltpu.PrefetchScalarGridSpec(
            num_scalar_prefetch=0,
            grid=grid,
            in_specs=[pl.BlockSpec((tm, tn), lambda i, j: (i, j))],
            out_specs=pl.BlockSpec((tm, tn), lambda i, j: (i, j)),
        ),
        # Identity write: alias the output onto the input so no separate HBM
        # output buffer is materialized (XLA falls back to a copy if the input
        # cannot be donated, which stays correct).
        input_output_aliases={0: 0},
        compiler_params=pltpu.CompilerParams(
            # Memory-bound copy: both axes independent -> shard across the
            # two TensorCores on v7x (harmless on v5e/v6e single-TC chips).
            dimension_semantics=("parallel", "parallel"),
        ),
    )(x2d)


def node_init_value(inputs: jax.Array, *, min_pallas_bytes: int = 1 << 20) -> jax.Array:
    """Node-value initialization (value <- inputs).

    Tiny or lane-irregular states take the zero-copy fast path (JAX arrays are
    immutable, so aliasing the input is safe and strictly fastest).  Large,
    nicely divisible states go through the tiled Pallas kernel.
    """
    total = inputs.size
    total_bytes = total * inputs.dtype.itemsize
    if total_bytes < min_pallas_bytes or total % 1024 != 0:
        # Zero-copy fast path: the value *is* the input.
        return inputs
    rows, lanes = _choose_lane_layout(total)
    flat = inputs.reshape(rows, lanes)        # glue: lane-dense slab
    out = _node_init_2d(flat)                 # Pallas hot path
    return out.reshape(inputs.shape)


class Node:
    """JAX/Pallas analogue of pyromancy.nodes.base.Node.

    Stores a base shape (with an implicit placeholder batch dim) and, on
    forward, initializes its value from the inputs (training mode) and
    returns it.
    """
    # TODO(synk): nn.Module parameter registration, the @eparameters/@mparameters
    # decorators and the Shape placeholder object are Python-side plumbing with
    # no Pallas equivalent; only the forward-pass data path is implemented here.

    def __init__(self, *shape: int, min_pallas_bytes: int = 1 << 20):
        # Placeholder 0th (batch) dimension is implicit (Shape(None, *shape)).
        self._shape = tuple(shape)
        self._value = None
        self._min_pallas_bytes = min_pallas_bytes

    @property
    def shape(self):
        return self._shape

    @property
    def bshape(self):
        return self._shape

    @property
    def size(self):
        s = 1
        for d in self._shape:
            s *= d
        return s

    def reset(self):
        self._value = None

    def forward(self, inputs: jax.Array, training: bool = True) -> jax.Array:
        # inputs: (N, *self._shape) with leading placeholder batch dim.
        assert tuple(inputs.shape[1:]) == self._shape, (
            f"input base shape {tuple(inputs.shape[1:])} != node shape {self._shape}"
        )
        if training or self._value is None:
            self._value = node_init_value(
                inputs, min_pallas_bytes=self._min_pallas_bytes
            )
        return self._value

    __call__ = forward


if __name__ == "__main__":
    key = jax.random.PRNGKey(0)
    N, C, H, W = 2, 4, 16, 16
    x = jax.random.normal(key, (N, C, H, W), dtype=jnp.float32)

    # Default node: 32 KiB state -> zero-copy fast path (no kernel overhead).
    node_fast = Node(C, H, W)
    out_fast = jax.block_until_ready(node_fast(x, training=True))

    # Force the Pallas path once to validate the kernel on-device.
    node_pallas = Node(C, H, W, min_pallas_bytes=0)
    out_pallas = jax.block_until_ready(node_pallas(x, training=True))

    # Correctness: training-mode forward initializes the value from inputs.
    assert out_fast.shape == (N, C, H, W) and out_pallas.shape == (N, C, H, W)
    assert out_fast.dtype == x.dtype and out_pallas.dtype == x.dtype
    assert bool(jnp.allclose(out_fast, x))
    assert bool(jnp.allclose(out_pallas, x))

    # Eval mode returns the stored value without re-initializing.
    out_eval = jax.block_until_ready(node_pallas(x, training=False))
    assert bool(jnp.allclose(out_eval, x))

    print("KERNEL_OK")
</pallas_src>

<mosaic_0001>
module attributes {stable_mosaic.version = 11 : i64} {
  func.func @_node_init_kernel(%arg0: i32, %arg1: i32, %arg2: memref<8x256xf32, #tpu.memory_space<vmem>>, %arg3: memref<8x256xf32, #tpu.memory_space<vmem>>) attributes {dimension_semantics = [#tpu.dimension_semantics<parallel>, #tpu.dimension_semantics<parallel>], iteration_bounds = array<i64: 1, 1>, scalar_prefetch = 0 : i64, scratch_operands = 0 : i64, tpu.core_type = #tpu.core_type<tc>, window_params = [{transform_indices = @transform_0, window_bounds = array<i64: 8, 256>}, {transform_indices = @transform_1, window_bounds = array<i64: 8, 256>}]} {
    %c0 = arith.constant 0 : index
    %c0_0 = arith.constant 0 : index
    %0 = vector.load %arg2[%c0, %c0_0] : memref<8x256xf32, #tpu.memory_space<vmem>>, vector<8x256xf32>
    %c0_1 = arith.constant 0 : index
    %c0_2 = arith.constant 0 : index
    %1 = vector.load %arg3[%c0_1, %c0_2] : memref<8x256xf32, #tpu.memory_space<vmem>>, vector<8x256xf32>
    tpu.vector_store %arg3[%c0_1, %c0_2], %0 {strides = array<i32>} : memref<8x256xf32, #tpu.memory_space<vmem>>, vector<8x256xf32>,
    return
  }
  func.func @transform_0(%arg0: i32, %arg1: i32) -> (i32, i32) {
    %c0_i32 = arith.constant 0 : i32
    return %arg0, %arg1 : i32, i32
  }
  func.func @transform_1(%arg0: i32, %arg1: i32) -> (i32, i32) {
    %c0_i32 = arith.constant 0 : i32
    return %arg0, %arg1 : i32, i32
  }
}

</mosaic_0001>

<bundles_post_ra>
// kernel: tpu_custom_call.1
= control target key start
LH: loop header
LB: loop body
LE: loop exit
PB: predicated region body
PF: predicated region fallthrough
CT: control target
= control target key end

     0   :  { %6 = vsyncpa [#allocation3], 0  ;;  %s104_s0 = inlined_call_operand.hbm [shape: f32[8,256], index: 0, kind: input, shape index: {}, may-alias: {0,1}]   ;;  %s105_s1 = inlined_call_operand.hbm [shape: f32[8,256], index: 1, kind: output, shape index: {}, may-alias: {0,1}]  }
   0x1   :  { %7 = vsyncpa [#allocation4], 0  ;;  %s86_s6 = smov [#allocation2]  }
   0x2   :  { %s14_s7 = sshll.u32 %s86_s6, 4  ;;  %s15_s7 = int_to_ptr.vmem [resolvable:$true] %s14_s7 }
   0x3   :  { %s50_s8 = scalar_lea.vmem %s15_s7, 256  ;;  %p55_p1 = scmp.lt.s32.totalorder %s15_s7, %s15_s7 }
   0x4   :  { %p51_p0 = scmp.ne.s32.totalorder %s15_s7, %s50_s8  ;;  %p56_p2 = scmp.lt.s32.totalorder %s50_s8, %s50_s8 }
   0x6   :  { %p57_p3 = por %p56_p2, %p55_p1 }
   0x8   :  { %p58_p4 = pnand %p57_p3, %p51_p0 }
   0xa   :  { %61 = shalt.err (!%p58_p4)
}
   0xb   :  { %17 = dma.hbm_to_vmem [thread:$0]  %s104_s0, 256, %s15_s7, [#allocation3]  }
   0xc   :  { %82 = dma.done.wait [#allocation3], 256  }
   0xd   :  { %83 = vsyncadd [#allocation3], 4294967040  ;;  %s87_s11 = smov [#allocation5]   ;;  %v21_v0 = vld [vmem:[#allocation2] sm:$0xff]  ;;  %v22_v1 = vld [vmem:[#allocation2 + $0x8] sm:$0xff] }
   0xe   :  { %s31_s12 = sshll.u32 %s87_s11, 4  ;;  %23 = vst [vmem:[#allocation5] sm:$0xff] %v21_v0  ;;  %24 = vst [vmem:[#allocation5 + $0x8] sm:$0xff] %v22_v1  ;;  %s32_s12 = int_to_ptr.vmem [resolvable:$true] %s31_s12 }
   0xf   :  { %s62_s13 = scalar_lea.vmem %s32_s12, 256  ;;  %p67_p6 = scmp.lt.s32.totalorder %s32_s12, %s32_s12 }
  0x10   :  { %p63_p5 = scmp.ne.s32.totalorder %s32_s12, %s62_s13  ;;  %p68_p7 = scmp.lt.s32.totalorder %s62_s13, %s62_s13 }
  0x12   :  { %p69_p8 = por %p68_p7, %p67_p6 }
  0x14   :  { %p70_p9 = pnand %p69_p8, %p63_p5 }
  0x16   :  { %73 = shalt.err (!%p70_p9)
}
  0x17   :  { %34 = dma.vmem_to_hbm [thread:$0]  %s32_s12, 256, %s105_s1, [#allocation4]  }
  0x18   :  { %84 = dma.done.wait [#allocation4], 256  }
  0x19   :  { %85 = vsyncadd [#allocation4], 4294967040 }
  0x1a   :  { %38 = vsyncpa [#allocation3], 1 }
  0x1b   :  { %39 = vsyncpa [#allocation4], 1 }

</bundles_post_ra>
